<compile_context>
chip_gen: v5e
topology: v5e:2x2
jax: 0.10.0
libtpu: 0.0.40
codegen_flags: <defaults>
</compile_context>

<pallas_src>
import jax
import jax.numpy as jnp
from jax.experimental import pallas as pl
from jax.experimental.pallas import tpu as pltpu

IN_DIM = 28 * 28   # 784
H_DIM = 128
OUT_DIM = 10
OUT_PAD = 128      # lane-dense padded logits width


def mlp_kernel(x_ref, w1_ref, b1_ref, w2_ref, b2_ref, w3_ref, b3_ref, o_ref):
    # x / weights arrive as bf16 (native MXU dtype); accumulate in f32.
    x = x_ref[...]                                                      # (TB, 784) bf16

    # fc1 + relu
    h1 = jnp.dot(x, w1_ref[...], preferred_element_type=jnp.float32)   # (TB, 128) f32
    h1 = jnp.maximum(h1 + b1_ref[...], 0.0).astype(jnp.bfloat16)
    # dropout (eval mode) -> identity

    # fc2 + relu
    h2 = jnp.dot(h1, w2_ref[...], preferred_element_type=jnp.float32)  # (TB, 128) f32
    h2 = jnp.maximum(h2 + b2_ref[...], 0.0).astype(jnp.bfloat16)
    # dropout (eval mode) -> identity

    # fc3 (logits, padded to 128 lanes; no activation)
    logits = jnp.dot(h2, w3_ref[...], preferred_element_type=jnp.float32)  # (TB, 128)
    o_ref[...] = (logits + b3_ref[...]).astype(o_ref.dtype)


def net_forward(x_nchw, params, *, tile_b=256):
    """x_nchw: (B, 1, 28, 28) float32.  Returns logits (B, 10) float32."""
    w1, b1, w2, b2, w3, b3 = params
    B = x_nchw.shape[0]
    x = x_nchw.reshape(B, IN_DIM)                     # == x.view(-1, 28*28)

    # Batch tile: multiple of 8 (sublane), no bigger than the rounded-up batch.
    tile_b = max(8, (tile_b // 8) * 8)
    tile_b = min(tile_b, ((B + 7) // 8) * 8)
    grid = (pl.cdiv(B, tile_b),)   # ragged last block is masked by Pallas (no HBM re-pad of x)

    # bf16 matmul operands (f32 accumulation inside the kernel); biases stay f32.
    x_bf = x.astype(jnp.bfloat16)
    w1_bf = w1.astype(jnp.bfloat16)
    w2_bf = w2.astype(jnp.bfloat16)
    # Lane-dense output: pad fc3 weights / bias to 128 output columns (zeros beyond 10).
    w3_bf = jnp.zeros((H_DIM, OUT_PAD), jnp.bfloat16).at[:, :OUT_DIM].set(
        w3.astype(jnp.bfloat16))
    b3_pad = jnp.zeros((1, OUT_PAD), jnp.float32).at[:, :OUT_DIM].set(
        b3.astype(jnp.float32))
    b1_f = b1.astype(jnp.float32)
    b2_f = b2.astype(jnp.float32)

    out = pl.pallas_call(
        mlp_kernel,
        out_shape=jax.ShapeDtypeStruct((B, OUT_PAD), jnp.float32),
        grid_spec=pltpu.PrefetchScalarGridSpec(
            num_scalar_prefetch=0,
            grid=grid,
            in_specs=[
                pl.BlockSpec((tile_b, IN_DIM), lambda i: (i, 0)),    # x tile (bf16)
                pl.BlockSpec((IN_DIM, H_DIM), lambda i: (0, 0)),     # w1 (constant index)
                pl.BlockSpec((1, H_DIM), lambda i: (0, 0)),          # b1
                pl.BlockSpec((H_DIM, H_DIM), lambda i: (0, 0)),      # w2
                pl.BlockSpec((1, H_DIM), lambda i: (0, 0)),          # b2
                pl.BlockSpec((H_DIM, OUT_PAD), lambda i: (0, 0)),    # w3 (padded to 128)
                pl.BlockSpec((1, OUT_PAD), lambda i: (0, 0)),        # b3 (padded to 128)
            ],
            out_specs=pl.BlockSpec((tile_b, OUT_PAD), lambda i: (i, 0)),
        ),
        compiler_params=pltpu.CompilerParams(
            dimension_semantics=("parallel",)),
    )(x_bf, w1_bf, b1_f, w2_bf, b2_f, w3_bf, b3_pad)

    return out[:, :OUT_DIM]


def init_params(key):
    """Deterministic init mirroring nn.Linear's U(-1/sqrt(fan_in), 1/sqrt(fan_in))."""
    ks = jax.random.split(key, 6)

    def linear(kw, kb, fan_in, fan_out):
        bound = 1.0 / jnp.sqrt(jnp.float32(fan_in))
        w = jax.random.uniform(kw, (fan_in, fan_out), jnp.float32, -bound, bound)
        b = jax.random.uniform(kb, (1, fan_out), jnp.float32, -bound, bound)
        return w, b

    w1, b1 = linear(ks[0], ks[1], IN_DIM, H_DIM)
    w2, b2 = linear(ks[2], ks[3], H_DIM, H_DIM)
    w3, b3 = linear(ks[4], ks[5], H_DIM, OUT_DIM)
    return (w1, b1, w2, b2, w3, b3)


def reference_forward(x_nchw, params):
    """Pure-JAX reference with the same bf16-operand / f32-accumulate recipe."""
    w1, b1, w2, b2, w3, b3 = params
    bf = jnp.bfloat16
    x = x_nchw.reshape(x_nchw.shape[0], IN_DIM)
    h1 = jnp.maximum(
        jnp.dot(x.astype(bf), w1.astype(bf), preferred_element_type=jnp.float32) + b1, 0.0)
    h2 = jnp.maximum(
        jnp.dot(h1.astype(bf), w2.astype(bf), preferred_element_type=jnp.float32) + b2, 0.0)
    return jnp.dot(h2.astype(bf), w3.astype(bf), preferred_element_type=jnp.float32) + b3


if __name__ == "__main__":
    key = jax.random.PRNGKey(0)
    k_x, k_p = jax.random.split(key)

    B = 16
    x = jax.random.normal(k_x, (B, 1, 28, 28), dtype=jnp.float32)  # NCHW like torch
    params = init_params(k_p)

    ref = reference_forward(x, params)

    # Default (large-tile) path: tile_b clamps to the small batch -> grid = 1.
    out = jax.block_until_ready(net_forward(x, params))
    assert out.shape == (B, OUT_DIM), out.shape
    assert jnp.allclose(out, ref, atol=1e-2, rtol=1e-2), \
        float(jnp.max(jnp.abs(out - ref)))

    # Multi-step grid path (exercises the pipelined / 'parallel' batch axis).
    out2 = jax.block_until_ready(net_forward(x, params, tile_b=8))
    assert jnp.allclose(out2, ref, atol=1e-2, rtol=1e-2), \
        float(jnp.max(jnp.abs(out2 - ref)))

    print("KERNEL_OK")
</pallas_src>

<mosaic_0001>
module attributes {stable_mosaic.version = 11 : i64} {
  func.func @mlp_kernel(%arg0: i32, %arg1: memref<16x784xbf16, #tpu.memory_space<vmem>>, %arg2: memref<784x128xbf16, #tpu.memory_space<vmem>>, %arg3: memref<1x128xf32, #tpu.memory_space<vmem>>, %arg4: memref<128x128xbf16, #tpu.memory_space<vmem>>, %arg5: memref<1x128xf32, #tpu.memory_space<vmem>>, %arg6: memref<128x128xbf16, #tpu.memory_space<vmem>>, %arg7: memref<1x128xf32, #tpu.memory_space<vmem>>, %arg8: memref<16x128xf32, #tpu.memory_space<vmem>>) attributes {dimension_semantics = [#tpu.dimension_semantics<parallel>], iteration_bounds = array<i64: 1>, scalar_prefetch = 0 : i64, scratch_operands = 0 : i64, tpu.core_type = #tpu.core_type<tc>, window_params = [{transform_indices = @transform_0, window_bounds = array<i64: 16, 784>}, {pipeline_mode = #tpu.pipeline_mode<synchronous>, transform_indices = @transform_1, window_bounds = array<i64: 784, 128>}, {pipeline_mode = #tpu.pipeline_mode<synchronous>, transform_indices = @transform_2, window_bounds = array<i64: 1, 128>}, {pipeline_mode = #tpu.pipeline_mode<synchronous>, transform_indices = @transform_3, window_bounds = array<i64: 128, 128>}, {pipeline_mode = #tpu.pipeline_mode<synchronous>, transform_indices = @transform_4, window_bounds = array<i64: 1, 128>}, {pipeline_mode = #tpu.pipeline_mode<synchronous>, transform_indices = @transform_5, window_bounds = array<i64: 128, 128>}, {pipeline_mode = #tpu.pipeline_mode<synchronous>, transform_indices = @transform_6, window_bounds = array<i64: 1, 128>}, {transform_indices = @transform_7, window_bounds = array<i64: 16, 128>}]} {
    %c0 = arith.constant 0 : index
    %c0_0 = arith.constant 0 : index
    %0 = vector.load %arg1[%c0, %c0_0] : memref<16x784xbf16, #tpu.memory_space<vmem>>, vector<16x784xbf16>
    %c0_1 = arith.constant 0 : index
    %c0_2 = arith.constant 0 : index
    %1 = vector.load %arg2[%c0_1, %c0_2] : memref<784x128xbf16, #tpu.memory_space<vmem>>, vector<784x128xbf16>
    %cst = arith.constant dense<0.000000e+00> : vector<16x128xf32>
    %2 = tpu.matmul %0, %1, %cst {dimension_numbers = #tpu.dot_dimension_numbers<[1], [0], [0], [1], [0, 0, 1, 1], [], []>} : vector<16x784xbf16>, vector<784x128xbf16>, vector<16x128xf32> -> vector<16x128xf32>
    %c0_3 = arith.constant 0 : index
    %c0_4 = arith.constant 0 : index
    %3 = vector.load %arg3[%c0_3, %c0_4] : memref<1x128xf32, #tpu.memory_space<vmem>>, vector<1x128xf32>
    %4 = vector.broadcast %3 : vector<1x128xf32> to vector<16x128xf32>
    %5 = arith.addf %2, %4 : vector<16x128xf32>
    %cst_5 = arith.constant 0.000000e+00 : f32
    %6 = vector.broadcast %cst_5 : f32 to vector<16x128xf32>
    %7 = arith.maximumf %5, %6 : vector<16x128xf32>
    %8 = arith.truncf %7 : vector<16x128xf32> to vector<16x128xbf16>
    %c0_6 = arith.constant 0 : index
    %c0_7 = arith.constant 0 : index
    %9 = vector.load %arg4[%c0_6, %c0_7] : memref<128x128xbf16, #tpu.memory_space<vmem>>, vector<128x128xbf16>
    %cst_8 = arith.constant dense<0.000000e+00> : vector<16x128xf32>
    %10 = tpu.matmul %8, %9, %cst_8 {dimension_numbers = #tpu.dot_dimension_numbers<[1], [0], [0], [1], [0, 0, 1, 1], [], []>} : vector<16x128xbf16>, vector<128x128xbf16>, vector<16x128xf32> -> vector<16x128xf32>
    %c0_9 = arith.constant 0 : index
    %c0_10 = arith.constant 0 : index
    %11 = vector.load %arg5[%c0_9, %c0_10] : memref<1x128xf32, #tpu.memory_space<vmem>>, vector<1x128xf32>
    %12 = vector.broadcast %11 : vector<1x128xf32> to vector<16x128xf32>
    %13 = arith.addf %10, %12 : vector<16x128xf32>
    %cst_11 = arith.constant 0.000000e+00 : f32
    %14 = vector.broadcast %cst_11 : f32 to vector<16x128xf32>
    %15 = arith.maximumf %13, %14 : vector<16x128xf32>
    %16 = arith.truncf %15 : vector<16x128xf32> to vector<16x128xbf16>
    %c0_12 = arith.constant 0 : index
    %c0_13 = arith.constant 0 : index
    %17 = vector.load %arg6[%c0_12, %c0_13] : memref<128x128xbf16, #tpu.memory_space<vmem>>, vector<128x128xbf16>
    %cst_14 = arith.constant dense<0.000000e+00> : vector<16x128xf32>
    %18 = tpu.matmul %16, %17, %cst_14 {dimension_numbers = #tpu.dot_dimension_numbers<[1], [0], [0], [1], [0, 0, 1, 1], [], []>} : vector<16x128xbf16>, vector<128x128xbf16>, vector<16x128xf32> -> vector<16x128xf32>
    %c0_15 = arith.constant 0 : index
    %c0_16 = arith.constant 0 : index
    %19 = vector.load %arg7[%c0_15, %c0_16] : memref<1x128xf32, #tpu.memory_space<vmem>>, vector<1x128xf32>
    %20 = vector.broadcast %19 : vector<1x128xf32> to vector<16x128xf32>
    %21 = arith.addf %18, %20 : vector<16x128xf32>
    %c0_17 = arith.constant 0 : index
    %c0_18 = arith.constant 0 : index
    %22 = vector.load %arg8[%c0_17, %c0_18] : memref<16x128xf32, #tpu.memory_space<vmem>>, vector<16x128xf32>
    tpu.vector_store %arg8[%c0_17, %c0_18], %21 {strides = array<i32>} : memref<16x128xf32, #tpu.memory_space<vmem>>, vector<16x128xf32>,
    return
  }
  func.func @transform_0(%arg0: i32) -> (i32, i32) {
    %c0_i32 = arith.constant 0 : i32
    %c0_i32_0 = arith.constant 0 : i32
    return %arg0, %c0_i32 : i32, i32
  }
  func.func @transform_1(%arg0: i32) -> (i32, i32) {
    %c0_i32 = arith.constant 0 : i32
    %c0_i32_0 = arith.constant 0 : i32
    %c0_i32_1 = arith.constant 0 : i32
    return %c0_i32, %c0_i32_0 : i32, i32
  }
  func.func @transform_2(%arg0: i32) -> (i32, i32) {
    %c0_i32 = arith.constant 0 : i32
    %c0_i32_0 = arith.constant 0 : i32
    %c0_i32_1 = arith.constant 0 : i32
    return %c0_i32, %c0_i32_0 : i32, i32
  }
  func.func @transform_3(%arg0: i32) -> (i32, i32) {
    %c0_i32 = arith.constant 0 : i32
    %c0_i32_0 = arith.constant 0 : i32
    %c0_i32_1 = arith.constant 0 : i32
    return %c0_i32, %c0_i32_0 : i32, i32
  }
  func.func @transform_4(%arg0: i32) -> (i32, i32) {
    %c0_i32 = arith.constant 0 : i32
    %c0_i32_0 = arith.constant 0 : i32
    %c0_i32_1 = arith.constant 0 : i32
    return %c0_i32, %c0_i32_0 : i32, i32
  }
  func.func @transform_5(%arg0: i32) -> (i32, i32) {
    %c0_i32 = arith.constant 0 : i32
    %c0_i32_0 = arith.constant 0 : i32
    %c0_i32_1 = arith.constant 0 : i32
    return %c0_i32, %c0_i32_0 : i32, i32
  }
  func.func @transform_6(%arg0: i32) -> (i32, i32) {
    %c0_i32 = arith.constant 0 : i32
    %c0_i32_0 = arith.constant 0 : i32
    %c0_i32_1 = arith.constant 0 : i32
    return %c0_i32, %c0_i32_0 : i32, i32
  }
  func.func @transform_7(%arg0: i32) -> (i32, i32) {
    %c0_i32 = arith.constant 0 : i32
    %c0_i32_0 = arith.constant 0 : i32
    return %arg0, %c0_i32 : i32, i32
  }
}

</mosaic_0001>

<bundles_post_ra>
// kernel: tpu_custom_call.1
= control target key start
LH: loop header
LB: loop body
LE: loop exit
PB: predicated region body
PF: predicated region fallthrough
CT: control target
= control target key end

     0   :  { %12 = vsyncpa [#allocation3], 0  ;;  %s1403_s0 = inlined_call_operand.hbm [shape: bf16[16,784], index: 0, kind: input, shape index: {}]   ;;  %s1404_s1 = inlined_call_operand.hbm [shape: bf16[784,128], index: 1, kind: input, shape index: {}]   ;;  %s1405_s2 = inlined_call_operand.vmem [shape: f32[1,128], index: 2, kind: input, shape index: {}]   ;;  %s1406_s3 = inlined_call_operand.hbm [shape: bf16[128,128], index: 3, kind: input, shape index: {}]   ;;  %s1407_s4 = inlined_call_operand.vmem [shape: f32[1,128], index: 4, kind: input, shape index: {}]   ;;  %s1408_s5 = inlined_call_operand.hbm [shape: bf16[128,128], index: 5, kind: input, shape index: {}]   ;;  %s1409_s6 = inlined_call_operand.vmem [shape: f32[1,128], index: 6, kind: input, shape index: {}]   ;;  %s1410_s7 = inlined_call_operand.hbm [shape: f32[16,128], index: 7, kind: output, shape index: {}]  }
   0x1   :  { %13 = vsyncpa [#allocation6], 0 }
   0x2   :  { %14 = vsyncpa [#allocation9], 0  ;;  %s33_s26 = sshll.u32 %s1404_s1, 4  ;;  %s34_s26 = int_to_ptr.hbm [resolvable:$true] %s33_s26 }
   0x3   :  { %15 = vsyncpa [#allocation4], 0  ;;  %s1328_s27 = smov [#allocation5]   ;;  %s20_s8 = sshll.u32 %s1403_s0, 4  ;;  %s21_s8 = int_to_ptr.hbm [resolvable:$true] %s20_s8 }
   0x4   :  { %s35_s28 = sshll.u32 %s1328_s27, 4  ;;  %s1329_s9 = smov 64   ;;  %s36_s28 = int_to_ptr.vmem [resolvable:$true] %s35_s28 }
   0x5   :  { %s1330_s10 = smov 4   ;;  %s1331_s11 = smov [#allocation2]  }
   0x6   :  { %41 = dma.hbm_to_vmem [thread:$0]  %s34_s26, 6272, %s36_s28, [#allocation6], %s1329_s9, %s1329_s9, %s1330_s10  }
   0x7   :  { %s22_s12 = sshll.u32 %s1331_s11, 4  ;;  %s1332_s13 = smov 448   ;;  %s23_s12 = int_to_ptr.vmem [resolvable:$true] %s22_s12 }
   0x8   :  { %s1333_s14 = smov 28   ;;  %s48_s16 = sshll.u32 %s1406_s3, 4  ;;  %s49_s16 = int_to_ptr.hbm [resolvable:$true] %s48_s16 }
   0x9   :  { %28 = dma.hbm_to_vmem [thread:$0]  %s21_s8, 896, %s23_s12, [#allocation3], %s1332_s13, %s1332_s13, %s1333_s14  }
   0xa   :  { %s1334_s17 = smov [#allocation7]   ;;  %s63_s20 = sshll.u32 %s1408_s5, 4  ;;  %s64_s20 = int_to_ptr.hbm [resolvable:$true] %s63_s20 }
   0xb   :  { %s50_s18 = sshll.u32 %s1334_s17, 4  ;;  %s1335_s21 = smov [#allocation8]   ;;  %s51_s18 = int_to_ptr.vmem [resolvable:$true] %s50_s18 }
   0xc   :  { %56 = dma.hbm_to_vmem [thread:$0]  %s49_s16, 1024, %s51_s18, [#allocation6], %s1329_s9, %s1329_s9, %s1330_s10  }
   0xd   :  { %s65_s22 = sshll.u32 %s1335_s21, 4  ;;  %s66_s22 = int_to_ptr.vmem [resolvable:$true] %s65_s22 }
   0xe   :  { %71 = dma.hbm_to_vmem [thread:$0]  %s64_s20, 1024, %s66_s22, [#allocation9], %s1329_s9, %s1329_s9, %s1330_s10  }
   0xf   :  { %1320 = dma.done.wait [#allocation3], 896  }
  0x10   :  { %1321 = vsyncadd [#allocation3], 4294966400 }
  0x11   :  { %1322 = dma.done.wait [#allocation6], 7296  }
  0x12   :  { %1323 = vsyncadd [#allocation6], 4294960000 }
  0x13   :  { %1324 = dma.done.wait [#allocation9], 1024  }
  0x14   :  { %1325 = vsyncadd [#allocation9], 4294966272  ;;  %v1128_v0 = vld [vmem:[#allocation5 + $0x38] sm:$0xff]  ;;  %v1127_v4 = vld [vmem:[#allocation5 + $0x30] sm:$0xff]  ;;  %vm530_vm0 = vcmask 130048   ;;  %s1336_s26 = smov [#allocation10]  }
  0x15   :  { %v1136_v1 = vld [vmem:[#allocation5 + $0x78] sm:$0xff]  ;;  %534 = vmatpush.bf16.msra.mxu0 %v1128_v0  ;;  %v1135_v5 = vld [vmem:[#allocation5 + $0x70] sm:$0xff]  ;;  %v1126_v8 = vld [vmem:[#allocation5 + $0x28] sm:$0xff]  ;;  %s808_s27 = sshll.u32 %s1336_s26, 4  ;;  %s1337_s30 = smov 128   ;;  %s809_s27 = int_to_ptr.vmem [resolvable:$true] %s808_s27 }
  0x16   :  { %v1144_v2 = vld [vmem:[#allocation5 + $0xb8] sm:$0xff]  ;;  %548 = vmatpush.bf16.msra.mxu1 %v1136_v1  ;;  %v1143_v6 = vld [vmem:[#allocation5 + $0xb0] sm:$0xff]  ;;  %v1134_v9 = vld [vmem:[#allocation5 + $0x68] sm:$0xff]  ;;  %s1338_s8 = smov 8  }
  0x17   :  { %v1152_v3 = vld [vmem:[#allocation5 + $0xf8] sm:$0xff]  ;;  %562 = vmatpush.bf16.msra.mxu2 %v1144_v2  ;;  %v1151_v7 = vld [vmem:[#allocation5 + $0xf0] sm:$0xff]  ;;  %v1142_v10 = vld [vmem:[#allocation5 + $0xa8] sm:$0xff] }
  0x18   :  { %576 = vmatpush.bf16.msra.mxu3 %v1152_v3  ;;  %v1150_v11 = vld [vmem:[#allocation5 + $0xe8] sm:$0xff]  ;;  %v1125_v12 = vld [vmem:[#allocation5 + $0x20] sm:$0xff]  ;;  %v1124_v16 = vld [vmem:[#allocation5 + $0x18] sm:$0xff] }
  0x19   :  { %535 = vmatpush.bf16.msra.mxu0 %v1127_v4  ;;  %v1133_v13 = vld [vmem:[#allocation5 + $0x60] sm:$0xff]  ;;  %v1132_v17 = vld [vmem:[#allocation5 + $0x58] sm:$0xff]  ;;  %v1123_v20 = vld [vmem:[#allocation5 + $0x10] sm:$0xff] }
  0x1a   :  { %549 = vmatpush.bf16.msra.mxu1 %v1135_v5  ;;  %v1141_v14 = vld [vmem:[#allocation5 + $0xa0] sm:$0xff]  ;;  %v1140_v18 = vld [vmem:[#allocation5 + $0x98] sm:$0xff]  ;;  %v1131_v21 = vld [vmem:[#allocation5 + $0x50] sm:$0xff] }
  0x1b   :  { %563 = vmatpush.bf16.msra.mxu2 %v1143_v6  ;;  %v1149_v15 = vld [vmem:[#allocation5 + $0xe0] sm:$0xff]  ;;  %v1148_v19 = vld [vmem:[#allocation5 + $0xd8] sm:$0xff]  ;;  %v1139_v22 = vld [vmem:[#allocation5 + $0x90] sm:$0xff] }
  0x1c   :  { %577 = vmatpush.bf16.msra.mxu3 %v1151_v7  ;;  %v1147_v23 = vld [vmem:[#allocation5 + $0xd0] sm:$0xff]  ;;  %v1122_v24 = vld [vmem:[#allocation5 + $0x8] sm:$0xff]  ;;  %v1121_v28 = vld [vmem:[#allocation5] sm:$0xff] }
  0x1d   :  { %536 = vmatpush.bf16.msra.mxu0 %v1126_v8  ;;  %v1130_v25 = vld [vmem:[#allocation5 + $0x48] sm:$0xff]  ;;  %v1129_v29 = vld [vmem:[#allocation5 + $0x40] sm:$0xff]  ;;  %v1160_v34 = vld [vmem:[#allocation5 + $0x138] sm:$0xff] }
  0x1e   :  { %550 = vmatpush.bf16.msra.mxu1 %v1134_v9  ;;  %v1138_v26 = vld [vmem:[#allocation5 + $0x88] sm:$0xff]  ;;  %v1117_v31 = vld [vmem:[#allocation2 + $0x18] sm:$0xf0]  ;;  %v1168_v35 = vld [vmem:[#allocation5 + $0x178] sm:$0xff] }
  0x1f   :  { %564 = vmatpush.bf16.msra.mxu2 %v1142_v10  ;;  %v1146_v27 = vld [vmem:[#allocation5 + $0xc8] sm:$0xff]  ;;  %v1137_v36 = vld [vmem:[#allocation5 + $0x80] sm:$0xff]  ;;  %v835_v38 = vld [vmem:[#allocation2 + $0x8] sm:$0xf] }
  0x20   :  { %578 = vmatpush.bf16.msra.mxu3 %v1150_v11  ;;  %v827_v30 = vld [vmem:[#allocation2] sm:$0xf]  ;;  %v1114_v32 = vld [vmem:[#allocation2 + $0x4] sm:$0xf]  ;;  %v1145_v37 = vld [vmem:[#allocation5 + $0xc0] sm:$0xff] }
  0x21   :  { %537 = vmatpush.bf16.msra.mxu0 %v1125_v12  ;;  %v829_v33 = vld [vmem:[#allocation2 + $0x1c] sm:$0xf0]  ;;  %v1118_v39 = vld [vmem:[#allocation2 + $0x20] sm:$0xf0]  ;;  %v828_v40 = vor.u32 %v1117_v31, %v827_v30  ;;  %v1115_v41 = vld [vmem:[#allocation2 + $0xc] sm:$0xf] }
  0x22   :  { %551 = vmatpush.bf16.msra.mxu1 %v1133_v13  ;;  %v837_v42 = vld [vmem:[#allocation2 + $0x24] sm:$0xf0]  ;;  %v832_v43 = vor.u32 %v1114_v32, %v829_v33  ;;  %v1169_v44 = vld [vmem:[#allocation5 + $0x180] sm:$0xff]  ;;  %v836_v47 = vor.u32 %v1118_v39, %v835_v38  ;;  %v1158_v49 = vld [vmem:[#allocation5 + $0x128] sm:$0xff] }
  0x23   :  { %565 = vmatpush.bf16.msra.mxu2 %v1141_v14  ;;  %v1159_v45 = vld [vmem:[#allocation5 + $0x130] sm:$0xff]  ;;  %v840_v48 = vor.u32 %v1115_v41, %v837_v42  ;;  %v1166_v50 = vld [vmem:[#allocation5 + $0x168] sm:$0xff]  ;;  %v1157_v51 = vld [vmem:[#allocation5 + $0x120] sm:$0xff] }
  0x24   :  { %579 = vmatpush.bf16.msra.mxu3 %v1149_v15  ;;  %v1167_v46 = vld [vmem:[#allocation5 + $0x170] sm:$0xff]  ;;  %v1165_v52 = vld [vmem:[#allocation5 + $0x160] sm:$0xff]  ;;  %v1156_v53 = vld [vmem:[#allocation5 + $0x118] sm:$0xff] }
  0x25   :  { %538 = vmatpush.bf16.msra.mxu0 %v1124_v16  ;;  %v1164_v54 = vld [vmem:[#allocation5 + $0x158] sm:$0xff]  ;;  %v851_v55 = vld [vmem:[#allocation2 + $0x18] sm:$0xf]  ;;  %v1155_v57 = vld [vmem:[#allocation5 + $0x110] sm:$0xff] }
  0x26   :  { %552 = vmatpush.bf16.msra.mxu1 %v1132_v17  ;;  %v1120_v56 = vld [vmem:[#allocation2 + $0x30] sm:$0xf0]  ;;  %v1163_v58 = vld [vmem:[#allocation5 + $0x150] sm:$0xff]  ;;  %v1154_v60 = vld [vmem:[#allocation5 + $0x108] sm:$0xff] }
  0x27   :  { %566 = vmatpush.bf16.msra.mxu2 %v1140_v18  ;;  %v852_v59 = vor.u32 %v1120_v56, %v851_v55  ;;  %v1162_v61 = vld [vmem:[#allocation5 + $0x148] sm:$0xff]  ;;  %v1153_v62 = vld [vmem:[#allocation5 + $0x100] sm:$0xff]  ;;  %v843_v0 = vld [vmem:[#allocation2 + $0x10] sm:$0xf] }
  0x28   :  { %580 = vmatpush.bf16.msra.mxu3 %v1148_v19  ;;  %v1161_v63 = vld [vmem:[#allocation5 + $0x140] sm:$0xff]  ;;  %v1119_v1 = vld [vmem:[#allocation2 + $0x28] sm:$0xf0]  ;;  %v1116_v2 = vld [vmem:[#allocation2 + $0x14] sm:$0xf] }
  0x29   :  { %539 = vmatpush.bf16.msra.mxu0 %v1123_v20  ;;  %v845_v3 = vld [vmem:[#allocation2 + $0x2c] sm:$0xf0]  ;;  %v844_v4 = vor.u32 %v1119_v1, %v843_v0  ;;  %v1177_v6 = vld [vmem:[#allocation7 + $0x38] sm:$0xff]  ;;  %v1175_v8 = vld [vmem:[#allocation7 + $0x28] sm:$0xff] }
  0x2a   :  { %553 = vmatpush.bf16.msra.mxu1 %v1131_v21  ;;  %v848_v5 = vor.u32 %v1116_v2, %v845_v3  ;;  %v1176_v7 = vld [vmem:[#allocation7 + $0x30] sm:$0xff]  ;;  %v1174_v9 = vld [vmem:[#allocation7 + $0x20] sm:$0xff]  ;;  %v1173_v10 = vld [vmem:[#allocation7 + $0x18] sm:$0xff] }
  0x2b   :  { %567 = vmatpush.bf16.msra.mxu2 %v1139_v22  ;;  %v1172_v11 = vld [vmem:[#allocation7 + $0x10] sm:$0xff]  ;;  %v1171_v12 = vld [vmem:[#allocation7 + $0x8] sm:$0xff]  ;;  %v1170_v16 = vld [vmem:[#allocation7] sm:$0xff] }
  0x2c   :  { %581 = vmatpush.bf16.msra.mxu3 %v1147_v23  ;;  %v1197_v17 = vld [vmem:[%s1405_s2] ss:$0 sm:$0xff]  ;;  %v1185_v18 = vld [vmem:[#allocation8 + $0x38] sm:$0xff]  ;;  %v1184_v20 = vld [vmem:[#allocation8 + $0x30] sm:$0xff] }
  0x2d   :  { %540 = vmatpush.bf16.msra.mxu0 %v1122_v24  ;;  %v1198_v55 = vld [vmem:[%s1407_s4] ss:$0 sm:$0xff]  ;;  %s810_s4 = sshll.u32 %s1410_s7, 4  ;;  %s811_s4 = int_to_ptr.hbm [resolvable:$true] %s810_s4 }
  0x2e   :  { %554 = vmatpush.bf16.msra.mxu1 %v1130_v25  ;;  %v1183_v25 = vld [vmem:[#allocation8 + $0x28] sm:$0xff] }
  0x2f   :  { %568 = vmatpush.bf16.msra.mxu2 %v1138_v26 }
  0x30   :  { %582 = vmatpush.bf16.msra.mxu3 %v1146_v27 }
  0x31   :  { %541 = vmatpush.bf16.msra.mxu0 %v1121_v28 }
  0x32   :  { %555 = vmatpush.bf16.msra.mxu1 %v1129_v29  ;;  %v1182_v29 = vld [vmem:[#allocation8 + $0x20] sm:$0xff] }
  0x33   :  { %569 = vmatpush.bf16.msra.mxu2 %v1137_v36 }
  0x34   :  { %583 = vmatpush.bf16.msra.mxu3 %v1145_v37  ;;  %542 = vmatmul.bf16.vlgmr.msra.gmra.mxu0 %v828_v40 }
  0x35   :  { %590 = vmatpush.bf16.msrb.mxu0 %v1160_v34  ;;  %556 = vmatmul.bf16.vlgmr.msra.gmra.mxu1 %v832_v43 }
  0x36   :  { %604 = vmatpush.bf16.msrb.mxu1 %v1168_v35  ;;  %570 = vmatmul.bf16.vlgmr.msra.gmra.mxu2 %v836_v47 }
  0x37   :  { %625 = vmatpush.bf16.msrb.mxu2 %v1169_v44  ;;  %584 = vmatmul.bf16.vlgmr.msra.gmra.mxu3 %v840_v48 }
  0x38   :  { %703 = vmatpush.bf16.msrb.mxu3 %v1177_v6 }
  0x39   :  { %591 = vmatpush.bf16.msrb.mxu0 %v1159_v45 }
  0x3a   :  { %605 = vmatpush.bf16.msrb.mxu1 %v1167_v46 }
  0x3b   :  { %788 = vmatpush.bf16.msra.mxu2 %v1185_v18 }
  0x3c   :  { %704 = vmatpush.bf16.msrb.mxu3 %v1176_v7 }
  0x3d   :  { %592 = vmatpush.bf16.msrb.mxu0 %v1158_v49 }
  0x3e   :  { %606 = vmatpush.bf16.msrb.mxu1 %v1166_v50  ;;  %v1181_v50 = vld [vmem:[#allocation8 + $0x18] sm:$0xff] }
  0x3f   :  { %789 = vmatpush.bf16.msra.mxu2 %v1184_v20 }
  0x40   :  { %705 = vmatpush.bf16.msrb.mxu3 %v1175_v8 }
  0x41   :  { %593 = vmatpush.bf16.msrb.mxu0 %v1157_v51  ;;  %v1180_v51 = vld [vmem:[#allocation8 + $0x10] sm:$0xff] }
  0x42   :  { %607 = vmatpush.bf16.msrb.mxu1 %v1165_v52  ;;  %v1179_v52 = vld [vmem:[#allocation8 + $0x8] sm:$0xff] }
  0x43   :  { %790 = vmatpush.bf16.msra.mxu2 %v1183_v25 }
  0x44   :  { %706 = vmatpush.bf16.msrb.mxu3 %v1174_v9 }
  0x45   :  { %594 = vmatpush.bf16.msrb.mxu0 %v1156_v53  ;;  %v1178_v53 = vld [vmem:[#allocation8] sm:$0xff] }
  0x46   :  { %608 = vmatpush.bf16.msrb.mxu1 %v1164_v54  ;;  %1049 = vmatmul.msk.bf16.vlgmr.msrb.gmra.mxu2 %vm530_vm0, %v852_v59 }
  0x47   :  { %791 = vmatpush.bf16.msra.mxu2 %v1182_v29 }
  0x48   :  { %707 = vmatpush.bf16.msrb.mxu3 %v1173_v10 }
  0x49   :  { %595 = vmatpush.bf16.msrb.mxu0 %v1155_v57 }
  0x4a   :  { %609 = vmatpush.bf16.msrb.mxu1 %v1163_v58 }
  0x4b   :  { %792 = vmatpush.bf16.msra.mxu2 %v1181_v50 }
  0x4c   :  { %708 = vmatpush.bf16.msrb.mxu3 %v1172_v11 }
  0x4d   :  { %596 = vmatpush.bf16.msrb.mxu0 %v1154_v60 }
  0x4e   :  { %610 = vmatpush.bf16.msrb.mxu1 %v1162_v61 }
  0x4f   :  { %793 = vmatpush.bf16.msra.mxu2 %v1180_v51 }
  0x50   :  { %709 = vmatpush.bf16.msrb.mxu3 %v1171_v12 }
  0x51   :  { %597 = vmatpush.bf16.msrb.mxu0 %v1153_v62  ;;  %v1199_v62 = vld [vmem:[%s1409_s6] ss:$0 sm:$0xff] }
  0x52   :  { %611 = vmatpush.bf16.msrb.mxu1 %v1161_v63 }
  0x53   :  { %794 = vmatpush.bf16.msra.mxu2 %v1179_v52 }
  0x54   :  { %598 = vmatmul.bf16.vlgmr.msrb.gmra.mxu0 %v844_v4  ;;  %710 = vmatpush.bf16.msrb.mxu3 %v1170_v16 }
  0x55   :  { %612 = vmatmul.bf16.vlgmr.msrb.gmra.mxu1 %v848_v5 }
  0x57   :  { %795 = vmatpush.bf16.msra.mxu2 %v1178_v53 }
  0xb1   :  { %v543_v13 = vpop.f32.mrf.mxu0 }
  0xb2   :  { %v557_v14 = vpop.f32.mrf.mxu1  ;;  %v544_v19 = vadd.f32 %v1197_v17, %v543_v13 }
  0xb4   :  { %v558_v24 = vadd.f32 %v557_v14, %v544_v19 }
  0xb9   :  { %v571_v15 = vpop.f32.mrf.mxu2  ;;  %v545_v21 = vpop.f32.mrf.mxu0 }
  0xba   :  { %v559_v22 = vpop.f32.mrf.mxu1  ;;  %v585_v26 = vpop.f32.mrf.mxu3  ;;  %v546_v27 = vadd.f32 %v1197_v17, %v545_v21  ;;  %v572_v28 = vadd.f32 %v571_v15, %v558_v24 }
  0xbc   :  { %v560_v30 = vadd.f32 %v559_v22, %v546_v27  ;;  %v586_v33 = vadd.f32 %v585_v26, %v572_v28 }
  0xc1   :  { %v573_v23 = vpop.f32.mrf.mxu2 }
  0xc2   :  { %v574_v35 = vadd.f32 %v573_v23, %v560_v30  ;;  %v587_v37 = vpop.f32.mrf.mxu3 }
  0xc4   :  { %v588_v38 = vadd.f32 %v587_v37, %v574_v35 }
  0xc9   :  { %v627_v34 = vpop.f32.mrf.mxu2 }
  0xd1   :  { %v599_v31 = vpop.f32.mrf.mxu0  ;;  %v629_v45 = vpop.f32.mrf.mxu2 }
  0xd2   :  { %v613_v32 = vpop.f32.mrf.mxu1  ;;  %v600_v36 = vadd.f32 %v599_v31, %v586_v33 }
  0xd4   :  { %v614_v39 = vadd.f32 %v613_v32, %v600_v36 }
  0xd6   :  { %v628_v43 = vadd.f32 %v627_v34, %v614_v39 }
  0xd8   :  { %v632_v47 = vmax.f32 %v628_v43, 0.0 }
  0xd9   :  { %v601_v40 = vpop.f32.mrf.mxu0 }
  0xda   :  { %v602_v41 = vadd.f32 %v601_v40, %v588_v38  ;;  %v615_v42 = vpop.f32.mrf.mxu1 }
  0xdc   :  { %v616_v44 = vadd.f32 %v615_v42, %v602_v41 }
  0xde   :  { %v630_v46 = vadd.f32 %v629_v45, %v616_v44 }
  0xe0   :  { %v633_v48 = vmax.f32 %v630_v46, 0.0 }
  0xe2   :  { %v634_v49 = vpack.c.bf16 %v633_v48, %v632_v47 }
  0xe4   :  { %711 = vmatmul.bf16.vlgmr.msrb.gmra.mxu3 %v634_v49 }
 0x167   :  { %v712_v54 = vpop.f32.mrf.mxu3 }
 0x168   :  { %v713_v56 = vadd.f32 %v1198_v55, %v712_v54 }
 0x16a   :  { %v717_v59 = vmax.f32 %v713_v56, 0.0 }
 0x16f   :  { %v714_v57 = vpop.f32.mrf.mxu3 }
 0x170   :  { %v715_v58 = vadd.f32 %v1198_v55, %v714_v57 }
 0x172   :  { %v718_v60 = vmax.f32 %v715_v58, 0.0 }
 0x174   :  { %v719_v61 = vpack.c.bf16 %v718_v60, %v717_v59 }
 0x176   :  { %796 = vmatmul.bf16.vlgmr.msra.gmra.mxu2 %v719_v61 }
 0x1f9   :  { %v797_v63 = vpop.f32.mrf.mxu2 }
 0x1fa   :  { %v798_v0 = vadd.f32 %v1199_v62, %v797_v63 }
 0x1fc   :  { %802 = vst [vmem:[#allocation10] sm:$0xff] %v798_v0 }
 0x201   :  { %v799_v1 = vpop.f32.mrf.mxu2 }
 0x202   :  { %v800_v2 = vadd.f32 %v1199_v62, %v799_v1 }
 0x204   :  { %803 = vst [vmem:[#allocation10 + $0x8] sm:$0xff] %v800_v2 }
 0x205   :  { %816 = dma.vmem_to_hbm [thread:$0]  %s809_s27, 256, %s811_s4, [#allocation4], %s1337_s30, %s1337_s30, %s1338_s8  }
 0x206   :  { %1326 = dma.done.wait [#allocation4], 256  }
 0x207   :  { %1327 = vsyncadd [#allocation4], 4294967040 }
 0x208   :  { %821 = vsyncpa [#allocation3], 1 }
 0x209   :  { %822 = vsyncpa [#allocation6], 1 }
 0x20a   :  { %823 = vsyncpa [#allocation9], 1 }
 0x20b   :  { %824 = vsyncpa [#allocation4], 1 }

</bundles_post_ra>
